<compile_context>
chip_gen: v7x
topology: tpu7x:2x2x1
jax: 0.10.0
libtpu: 0.0.40
codegen_flags: <defaults>
</compile_context>

<pallas_src>
import functools

import jax
import jax.numpy as jnp
from jax.experimental import pallas as pl
from jax.experimental.pallas import tpu as pltpu

_LANES = 128
_SUB_ROWS = 256          # inner-chunk rows: (256,128) f32 = 32 vregs per operand
_ACC_ROWS = 32           # (32,128) accumulator = 4 vregs -> 4 independent add chains
_MAX_ROW_BLOCK = 4096    # (4096,128) f32 = 2 MiB per input per block


def _num_tensorcores():
    """Best-effort TensorCore count (2 on v7x); falls back to 1 (always safe)."""
    try:
        info = pltpu.get_tpu_info()
    except Exception:
        return 1
    for name in ("num_cores", "core_count", "num_tensorcores",
                 "tensor_cores_per_chip"):
        val = getattr(info, name, None)
        if val is None:
            continue
        try:
            val = int(val)
        except Exception:
            continue
        if val > 0:
            return val
    return 1


def _mape_kernel(yp_ref, yt_ref, *refs, epsilon, full_rows, tail, row_block,
                 sub_rows, acc_rows, blocks_per_core, validate, approx_recip):
    if validate:
        sum_ref, cnt_ref, acc_ref, vacc_ref = refs
    else:
        sum_ref, acc_ref = refs
        cnt_ref = vacc_ref = None

    c = pl.program_id(0)          # core-split axis ("parallel"; 2 TCs on v7x)
    i = pl.program_id(1)          # reduction axis ("arbitrary")

    @pl.when(i == 0)
    def _():
        acc_ref[...] = jnp.zeros_like(acc_ref)
        if validate:
            vacc_ref[...] = jnp.zeros_like(vacc_ref)

    # Logical (unclamped) block id.  The index_map clamps the DMA of
    # out-of-range "extra" steps onto the last real block; the mask on the
    # slow path zeroes their contribution.  All index math is in row units,
    # so no int32 overflow even for multi-billion-element inputs.
    blk = c * blocks_per_core + i
    r0 = blk * row_block
    is_full = (r0 + row_block) <= full_rows   # every element of block < n_elem

    eps = jnp.float32(epsilon)
    n_sub = row_block // sub_rows

    def run_block(masked):
        def body(j, carry):
            rloc = pl.multiple_of(j * sub_rows, sub_rows)
            yt = yt_ref[pl.ds(rloc, sub_rows), :].astype(jnp.float32)
            yp = yp_ref[pl.ds(rloc, sub_rows), :].astype(jnp.float32)
            denom = yt + eps
            if approx_recip:
                # EUP approximate reciprocal: the divide becomes one vmul.
                err = jnp.abs((yt - yp) * pl.reciprocal(denom, approx=True))
            else:
                err = jnp.abs((yt - yp) / denom)
            if masked:
                row_ids = jax.lax.broadcasted_iota(
                    jnp.int32, (sub_rows, _LANES), 0)
                g_row = row_ids + (r0 + rloc)
                if tail:
                    lane_ids = jax.lax.broadcasted_iota(
                        jnp.int32, (sub_rows, _LANES), 1)
                    valid = (g_row < full_rows) | (
                        (g_row == full_rows) & (lane_ids < tail))
                else:
                    valid = g_row < full_rows
                # Fused select: zero both inf errors and invalid (padding /
                # OOB) lanes in one pass.
                err = jnp.where(valid & jnp.logical_not(jnp.isinf(err)),
                                err, 0.0)
            else:
                err = jnp.where(jnp.isinf(err), 0.0, err)

            # Fold the chunk into the (32,128) accumulator: 4 independent
            # VALU add chains, no 255-deep dependency chain.
            acc_ref[...] += err.reshape(-1, acc_rows, _LANES).sum(axis=0)
            if validate:
                bad = yt <= 0.0
                if masked:
                    bad = bad & valid
                vacc_ref[...] += bad.astype(jnp.float32).reshape(
                    -1, acc_rows, _LANES).sum(axis=0)
            return carry

        jax.lax.fori_loop(0, n_sub, body, 0, unroll=True)

    @pl.when(is_full)
    def _():
        run_block(masked=False)       # fast path: no mask work at all

    @pl.when(jnp.logical_not(is_full))
    def _():
        run_block(masked=True)        # only the last real block / clamped steps

    @pl.when(i == pl.num_programs(1) - 1)
    def _():
        sum_ref[...] = acc_ref[...]
        if validate:
            cnt_ref[...] = vacc_ref[...]


def _as_kernel_dtype(x):
    x = jnp.asarray(x)
    if not jnp.issubdtype(x.dtype, jnp.floating) or x.dtype.itemsize > 4:
        x = x.astype(jnp.float32)
    return x


def mape_loss(y_pred, y_true, epsilon=1e-6, *, validate=True,
              approx_reciprocal=True):
    """MAPE loss matching the PyTorch MAPE_loss.forward semantics.

    validate=True (default, spec parity) raises ValueError if any
    y_true <= 0; the check reuses a violation count produced in the same
    kernel pass but forces a host sync.  Pass validate=False under jax.jit:
    the count output and all of its in-kernel work are compiled out.
    """
    yp = _as_kernel_dtype(y_pred)
    yt = _as_kernel_dtype(y_true)
    if yp.size != yt.size:
        raise ValueError("y_pred and y_true must have the same number of elements")
    n_elem = int(yp.size)
    if n_elem == 0:
        return jnp.float32(float("nan"))

    yp = yp.reshape(-1)
    yt = yt.reshape(-1)

    # Lane-dense (rows, 128) view.  Large inputs only need 128-element
    # alignment; small inputs are padded up to one 256-row sub-chunk so every
    # block divides cleanly into (sub_rows, 128) chunks.  Padding and OOB
    # rows are masked out inside the kernel.
    if n_elem >= _MAX_ROW_BLOCK * _LANES:
        align = _LANES
    else:
        align = _SUB_ROWS * _LANES
    pad = (-n_elem) % align
    if pad:
        yp = jnp.pad(yp, (0, pad))
        yt = jnp.pad(yt, (0, pad))
    rows = (n_elem + pad) // _LANES
    yp2 = yp.reshape(rows, _LANES)
    yt2 = yt.reshape(rows, _LANES)

    row_block = _MAX_ROW_BLOCK if rows >= _MAX_ROW_BLOCK else rows
    total_blocks = pl.cdiv(rows, row_block)
    # Hardware-aware core split: >1 only when the chip actually has >1 TC.
    # TODO(synk): on v7x, evaluate dimension_semantics=(CORE_PARALLEL, ARBITRARY).
    ncores = max(1, min(_num_tensorcores(), 2, total_blocks))
    blocks_per_core = pl.cdiv(total_blocks, ncores)

    full_rows = n_elem // _LANES     # rows whose 128 lanes are all valid
    tail = n_elem % _LANES           # valid lanes of row `full_rows` (0 -> none)

    def in_map(c, i):
        # Clamp so the "extra" steps of the last core never DMA out of
        # bounds; their contribution is masked to zero inside the kernel.
        return (jnp.minimum(c * blocks_per_core + i, total_blocks - 1), 0)

    kernel = functools.partial(
        _mape_kernel, epsilon=float(epsilon), full_rows=full_rows, tail=tail,
        row_block=row_block, sub_rows=_SUB_ROWS, acc_rows=_ACC_ROWS,
        blocks_per_core=blocks_per_core, validate=bool(validate),
        approx_recip=bool(approx_reciprocal))

    out_shape = [jax.ShapeDtypeStruct((_ACC_ROWS, ncores * _LANES), jnp.float32)]
    out_specs = [pl.BlockSpec((_ACC_ROWS, _LANES), lambda c, i: (0, c))]
    scratch = [pltpu.VMEM((_ACC_ROWS, _LANES), jnp.float32)]
    if validate:
        out_shape.append(jax.ShapeDtypeStruct((_ACC_ROWS, ncores * _LANES),
                                              jnp.float32))
        out_specs.append(pl.BlockSpec((_ACC_ROWS, _LANES), lambda c, i: (0, c)))
        scratch.append(pltpu.VMEM((_ACC_ROWS, _LANES), jnp.float32))

    results = pl.pallas_call(
        kernel,
        out_shape=tuple(out_shape),
        grid_spec=pltpu.PrefetchScalarGridSpec(
            num_scalar_prefetch=0,
            grid=(ncores, blocks_per_core),
            in_specs=[
                pl.BlockSpec((row_block, _LANES), in_map),
                pl.BlockSpec((row_block, _LANES), in_map),
            ],
            out_specs=tuple(out_specs),
            scratch_shapes=scratch),
        compiler_params=pltpu.CompilerParams(
            dimension_semantics=("parallel", "arbitrary")),
    )(yp2, yt2)

    if validate:
        sums, counts = results
        # Host-side raise mirroring the PyTorch ValueError (forces a sync;
        # not jit-compatible -- use validate=False under jit).
        if float(jnp.sum(counts)) > 0.0:
            raise ValueError("MAPE is undefined for values <= 0 in y_true")
    else:
        (sums,) = results

    return jnp.sum(sums) * (jnp.float32(100.0) / jnp.float32(n_elem))


def _ref_mape(y_pred, y_true, epsilon=1e-6):
    yt = jnp.asarray(y_true, jnp.float32)
    yp = jnp.asarray(y_pred, jnp.float32)
    err = jnp.abs((yt - yp) / (yt + epsilon))
    err = jnp.where(jnp.isinf(err), jnp.zeros_like(err), err)
    return jnp.mean(err) * 100.0


if __name__ == "__main__":
    root = jax.random.PRNGKey(0)

    cases = [
        ((2, 4, 16, 16), jnp.float32),    # primary small case (single masked block)
        ((3, 5, 7), jnp.float32),         # numel % 128 != 0 -> lane-tail masking
        ((2, 2049, 128), jnp.float32),    # >1 block: fast path + partial block (+2-core split)
        ((2, 4, 16, 16), jnp.bfloat16),   # bf16 fed straight to the kernel
    ]
    for idx, (shape, dtype) in enumerate(cases):
        k1, k2 = jax.random.split(jax.random.fold_in(root, idx))
        y_true = jax.random.uniform(k1, shape, jnp.float32, minval=0.5, maxval=2.0)
        y_pred = y_true + 0.1 * jax.random.normal(k2, shape, jnp.float32)
        y_true = y_true.astype(dtype)
        y_pred = y_pred.astype(dtype)

        ref = _ref_mape(y_pred, y_true)

        # Eager path with validation (PyTorch-parity semantics).
        loss = jax.block_until_ready(mape_loss(y_pred, y_true))
        assert jnp.allclose(loss, ref, rtol=5e-3, atol=1e-3), (
            shape, str(dtype), float(loss), float(ref))

        # jit-friendly fast path: validation work compiled out entirely.
        jloss = jax.block_until_ready(
            jax.jit(functools.partial(mape_loss, validate=False))(y_pred, y_true))
        assert jnp.allclose(jloss, ref, rtol=5e-3, atol=1e-3), (
            shape, str(dtype), float(jloss), float(ref))

    # The ValueError path (mirrors the PyTorch check on y_true <= 0).
    bad_true = jnp.ones((2, 4, 16, 16), jnp.float32).at[0, 0, 0, 0].set(-1.0)
    try:
        mape_loss(jnp.ones_like(bad_true), bad_true)
        raise AssertionError("expected ValueError for y_true <= 0")
    except ValueError:
        pass

    print("KERNEL_OK")
</pallas_src>

<mosaic_0001>
module attributes {stable_mosaic.version = 11 : i64} {
  func.func @_mape_kernel(%arg0: i32, %arg1: i32, %arg2: memref<256x128xf32, #tpu.memory_space<vmem>>, %arg3: memref<256x128xf32, #tpu.memory_space<vmem>>, %arg4: memref<32x128xf32, #tpu.memory_space<vmem>>, %arg5: memref<32x128xf32, #tpu.memory_space<vmem>>, %arg6: memref<32x128xf32, #tpu.memory_space<vmem>>, %arg7: memref<32x128xf32, #tpu.memory_space<vmem>>) attributes {dimension_semantics = [#tpu.dimension_semantics<parallel>, #tpu.dimension_semantics<arbitrary>], iteration_bounds = array<i64: 1, 1>, scalar_prefetch = 0 : i64, scratch_operands = 2 : i64, tpu.core_type = #tpu.core_type<tc>, window_params = [{transform_indices = @transform_0, window_bounds = array<i64: 256, 128>}, {transform_indices = @transform_1, window_bounds = array<i64: 256, 128>}, {transform_indices = @transform_2, window_bounds = array<i64: 32, 128>}, {transform_indices = @transform_3, window_bounds = array<i64: 32, 128>}]} {
    %c0_i32 = arith.constant 0 : i32
    %0 = arith.cmpi eq, %arg1, %c0_i32 : i32
    %1 = arith.extui %0 : i1 to i32
    %c0_i32_0 = arith.constant 0 : i32
    %2 = arith.cmpi ne, %1, %c0_i32_0 : i32
    scf.if %2 {
      %cst_7 = arith.constant 0.000000e+00 : f32
      %16 = vector.broadcast %cst_7 : f32 to vector<32x128xf32>
      %c0 = arith.constant 0 : index
      %c0_8 = arith.constant 0 : index
      %17 = vector.load %arg6[%c0, %c0_8] : memref<32x128xf32, #tpu.memory_space<vmem>>, vector<32x128xf32>
      tpu.vector_store %arg6[%c0, %c0_8], %16 {strides = array<i32>} : memref<32x128xf32, #tpu.memory_space<vmem>>, vector<32x128xf32>,
      %cst_9 = arith.constant 0.000000e+00 : f32
      %18 = vector.broadcast %cst_9 : f32 to vector<32x128xf32>
      %c0_10 = arith.constant 0 : index
      %c0_11 = arith.constant 0 : index
      %19 = vector.load %arg7[%c0_10, %c0_11] : memref<32x128xf32, #tpu.memory_space<vmem>>, vector<32x128xf32>
      tpu.vector_store %arg7[%c0_10, %c0_11], %18 {strides = array<i32>} : memref<32x128xf32, #tpu.memory_space<vmem>>, vector<32x128xf32>,
    } else {
    }
    %c1_i32 = arith.constant 1 : i32
    %3 = arith.muli %arg0, %c1_i32 : i32
    %4 = arith.addi %3, %arg1 : i32
    %c256_i32 = arith.constant 256 : i32
    %5 = arith.muli %4, %c256_i32 : i32
    %c256_i32_1 = arith.constant 256 : i32
    %6 = arith.addi %5, %c256_i32_1 : i32
    %c16_i32 = arith.constant 16 : i32
    %7 = arith.cmpi sle, %6, %c16_i32 : i32
    %8 = arith.extui %7 : i1 to i32
    %cst = arith.constant 9.99999997E-7 : f32
    %c0_i32_2 = arith.constant 0 : i32
    %9 = arith.cmpi ne, %8, %c0_i32_2 : i32
    scf.if %9 {
      %c0_i32_7 = arith.constant 0 : i32
      %c256_i32_8 = arith.constant 256 : i32
      %16 = arith.muli %c0_i32_7, %c256_i32_8 : i32
      %17 = tpu.assume_multiple %16, 256 : i32
      %18 = arith.index_cast %17 : i32 to index
      %c0 = arith.constant 0 : index
      %19 = vector.load %arg3[%18, %c0] : memref<256x128xf32, #tpu.memory_space<vmem>>, vector<256x128xf32>
      %20 = arith.index_cast %17 : i32 to index
      %c0_9 = arith.constant 0 : index
      %21 = vector.load %arg2[%20, %c0_9] : memref<256x128xf32, #tpu.memory_space<vmem>>, vector<256x128xf32>
      %22 = vector.broadcast %cst : f32 to vector<256x128xf32>
      %23 = arith.addf %19, %22 : vector<256x128xf32>
      %24 = arith.subf %19, %21 : vector<256x128xf32>
      %25 = tpu.reciprocal %23 {approx = true} : vector<256x128xf32> -> vector<256x128xf32>
      %26 = arith.mulf %24, %25 : vector<256x128xf32>
      %27 = math.absf %26 : vector<256x128xf32>
      %28 = math.absf %27 : vector<256x128xf32>
      %cst_10 = arith.constant 0x7F800000 : f32
      %29 = vector.broadcast %cst_10 : f32 to vector<256x128xf32>
      %30 = arith.cmpf oeq, %28, %29 : vector<256x128xf32>
      %cst_11 = arith.constant 0.000000e+00 : f32
      %31 = vector.broadcast %cst_11 : f32 to vector<256x128xf32>
      %32 = arith.select %30, %31, %27 : vector<256x128xi1>, vector<256x128xf32>
      %c0_12 = arith.constant 0 : index
      %c0_13 = arith.constant 0 : index
      %33 = vector.load %arg6[%c0_12, %c0_13] : memref<32x128xf32, #tpu.memory_space<vmem>>, vector<32x128xf32>
      %34 = vector.shape_cast %32 : vector<256x128xf32> to vector<8x32x128xf32>
      %cst_14 = arith.constant dense<0.000000e+00> : vector<32x128xf32>
      %35 = vector.multi_reduction <add>, %34, %cst_14 [0] : vector<8x32x128xf32> to vector<32x128xf32>
      %36 = arith.addf %33, %35 : vector<32x128xf32>
      %c0_15 = arith.constant 0 : index
      %c0_16 = arith.constant 0 : index
      %37 = vector.load %arg6[%c0_15, %c0_16] : memref<32x128xf32, #tpu.memory_space<vmem>>, vector<32x128xf32>
      tpu.vector_store %arg6[%c0_15, %c0_16], %36 {strides = array<i32>} : memref<32x128xf32, #tpu.memory_space<vmem>>, vector<32x128xf32>,
      %cst_17 = arith.constant 0.000000e+00 : f32
      %38 = vector.broadcast %cst_17 : f32 to vector<256x128xf32>
      %39 = arith.cmpf ole, %19, %38 : vector<256x128xf32>
      %c0_18 = arith.constant 0 : index
      %c0_19 = arith.constant 0 : index
      %40 = vector.load %arg7[%c0_18, %c0_19] : memref<32x128xf32, #tpu.memory_space<vmem>>, vector<32x128xf32>
      %41 = arith.extui %39 : vector<256x128xi1> to vector<256x128xi32>
      %42 = arith.sitofp %41 : vector<256x128xi32> to vector<256x128xf32>
      %43 = vector.shape_cast %42 : vector<256x128xf32> to vector<8x32x128xf32>
      %cst_20 = arith.constant dense<0.000000e+00> : vector<32x128xf32>
      %44 = vector.multi_reduction <add>, %43, %cst_20 [0] : vector<8x32x128xf32> to vector<32x128xf32>
      %45 = arith.addf %40, %44 : vector<32x128xf32>
      %c0_21 = arith.constant 0 : index
      %c0_22 = arith.constant 0 : index
      %46 = vector.load %arg7[%c0_21, %c0_22] : memref<32x128xf32, #tpu.memory_space<vmem>>, vector<32x128xf32>
      tpu.vector_store %arg7[%c0_21, %c0_22], %45 {strides = array<i32>} : memref<32x128xf32, #tpu.memory_space<vmem>>, vector<32x128xf32>,
      %c1_i32_23 = arith.constant 1 : i32
    } else {
    }
    %true = arith.constant true
    %10 = arith.xori %7, %true : i1
    %11 = arith.extui %10 : i1 to i32
    %cst_3 = arith.constant 9.99999997E-7 : f32
    %c0_i32_4 = arith.constant 0 : i32
    %12 = arith.cmpi ne, %11, %c0_i32_4 : i32
    scf.if %12 {
      %c0_i32_7 = arith.constant 0 : i32
      %c256_i32_8 = arith.constant 256 : i32
      %16 = arith.muli %c0_i32_7, %c256_i32_8 : i32
      %17 = tpu.assume_multiple %16, 256 : i32
      %18 = arith.index_cast %17 : i32 to index
      %c0 = arith.constant 0 : index
      %19 = vector.load %arg3[%18, %c0] : memref<256x128xf32, #tpu.memory_space<vmem>>, vector<256x128xf32>
      %20 = arith.index_cast %17 : i32 to index
      %c0_9 = arith.constant 0 : index
      %21 = vector.load %arg2[%20, %c0_9] : memref<256x128xf32, #tpu.memory_space<vmem>>, vector<256x128xf32>
      %22 = vector.broadcast %cst_3 : f32 to vector<256x128xf32>
      %23 = arith.addf %19, %22 : vector<256x128xf32>
      %24 = arith.subf %19, %21 : vector<256x128xf32>
      %25 = tpu.reciprocal %23 {approx = true} : vector<256x128xf32> -> vector<256x128xf32>
      %26 = arith.mulf %24, %25 : vector<256x128xf32>
      %27 = math.absf %26 : vector<256x128xf32>
      %28 = tpu.iota {dimensions = array<i32: 0>} : vector<256x128xi32>
      %29 = arith.addi %5, %17 : i32
      %30 = vector.broadcast %29 : i32 to vector<256x128xi32>
      %31 = arith.addi %28, %30 : vector<256x128xi32>
      %c16_i32_10 = arith.constant 16 : i32
      %32 = vector.broadcast %c16_i32_10 : i32 to vector<256x128xi32>
      %33 = arith.cmpi slt, %31, %32 : vector<256x128xi32>
      %34 = math.absf %27 : vector<256x128xf32>
      %cst_11 = arith.constant 0x7F800000 : f32
      %35 = vector.broadcast %cst_11 : f32 to vector<256x128xf32>
      %36 = arith.cmpf oeq, %34, %35 : vector<256x128xf32>
      %cst_12 = arith.constant dense<true> : vector<256x128xi1>
      %37 = arith.xori %36, %cst_12 : vector<256x128xi1>
      %38 = arith.andi %33, %37 : vector<256x128xi1>
      %cst_13 = arith.constant 0.000000e+00 : f32
      %39 = vector.broadcast %cst_13 : f32 to vector<256x128xf32>
      %40 = arith.select %38, %27, %39 : vector<256x128xi1>, vector<256x128xf32>
      %c0_14 = arith.constant 0 : index
      %c0_15 = arith.constant 0 : index
      %41 = vector.load %arg6[%c0_14, %c0_15] : memref<32x128xf32, #tpu.memory_space<vmem>>, vector<32x128xf32>
      %42 = vector.shape_cast %40 : vector<256x128xf32> to vector<8x32x128xf32>
      %cst_16 = arith.constant dense<0.000000e+00> : vector<32x128xf32>
      %43 = vector.multi_reduction <add>, %42, %cst_16 [0] : vector<8x32x128xf32> to vector<32x128xf32>
      %44 = arith.addf %41, %43 : vector<32x128xf32>
      %c0_17 = arith.constant 0 : index
      %c0_18 = arith.constant 0 : index
      %45 = vector.load %arg6[%c0_17, %c0_18] : memref<32x128xf32, #tpu.memory_space<vmem>>, vector<32x128xf32>
      tpu.vector_store %arg6[%c0_17, %c0_18], %44 {strides = array<i32>} : memref<32x128xf32, #tpu.memory_space<vmem>>, vector<32x128xf32>,
      %cst_19 = arith.constant 0.000000e+00 : f32
      %46 = vector.broadcast %cst_19 : f32 to vector<256x128xf32>
      %47 = arith.cmpf ole, %19, %46 : vector<256x128xf32>
      %48 = arith.andi %47, %33 : vector<256x128xi1>
      %c0_20 = arith.constant 0 : index
      %c0_21 = arith.constant 0 : index
      %49 = vector.load %arg7[%c0_20, %c0_21] : memref<32x128xf32, #tpu.memory_space<vmem>>, vector<32x128xf32>
      %50 = arith.extui %48 : vector<256x128xi1> to vector<256x128xi32>
      %51 = arith.sitofp %50 : vector<256x128xi32> to vector<256x128xf32>
      %52 = vector.shape_cast %51 : vector<256x128xf32> to vector<8x32x128xf32>
      %cst_22 = arith.constant dense<0.000000e+00> : vector<32x128xf32>
      %53 = vector.multi_reduction <add>, %52, %cst_22 [0] : vector<8x32x128xf32> to vector<32x128xf32>
      %54 = arith.addf %49, %53 : vector<32x128xf32>
      %c0_23 = arith.constant 0 : index
      %c0_24 = arith.constant 0 : index
      %55 = vector.load %arg7[%c0_23, %c0_24] : memref<32x128xf32, #tpu.memory_space<vmem>>, vector<32x128xf32>
      tpu.vector_store %arg7[%c0_23, %c0_24], %54 {strides = array<i32>} : memref<32x128xf32, #tpu.memory_space<vmem>>, vector<32x128xf32>,
      %c1_i32_25 = arith.constant 1 : i32
    } else {
    }
    %c0_i32_5 = arith.constant 0 : i32
    %13 = arith.cmpi eq, %arg1, %c0_i32_5 : i32
    %14 = arith.extui %13 : i1 to i32
    %c0_i32_6 = arith.constant 0 : i32
    %15 = arith.cmpi ne, %14, %c0_i32_6 : i32
    scf.if %15 {
      %c0 = arith.constant 0 : index
      %c0_7 = arith.constant 0 : index
      %16 = vector.load %arg6[%c0, %c0_7] : memref<32x128xf32, #tpu.memory_space<vmem>>, vector<32x128xf32>
      %c0_8 = arith.constant 0 : index
      %c0_9 = arith.constant 0 : index
      %17 = vector.load %arg4[%c0_8, %c0_9] : memref<32x128xf32, #tpu.memory_space<vmem>>, vector<32x128xf32>
      tpu.vector_store %arg4[%c0_8, %c0_9], %16 {strides = array<i32>} : memref<32x128xf32, #tpu.memory_space<vmem>>, vector<32x128xf32>,
      %c0_10 = arith.constant 0 : index
      %c0_11 = arith.constant 0 : index
      %18 = vector.load %arg7[%c0_10, %c0_11] : memref<32x128xf32, #tpu.memory_space<vmem>>, vector<32x128xf32>
      %c0_12 = arith.constant 0 : index
      %c0_13 = arith.constant 0 : index
      %19 = vector.load %arg5[%c0_12, %c0_13] : memref<32x128xf32, #tpu.memory_space<vmem>>, vector<32x128xf32>
      tpu.vector_store %arg5[%c0_12, %c0_13], %18 {strides = array<i32>} : memref<32x128xf32, #tpu.memory_space<vmem>>, vector<32x128xf32>,
    } else {
    }
    return
  }
  func.func @transform_0(%arg0: i32, %arg1: i32) -> (i32, i32) {
    %c1_i32 = arith.constant 1 : i32
    %0 = arith.muli %arg0, %c1_i32 : i32
    %1 = arith.addi %0, %arg1 : i32
    %c0_i32 = arith.constant 0 : i32
    %2 = arith.minsi %1, %c0_i32 : i32
    %c0_i32_0 = arith.constant 0 : i32
    %c0_i32_1 = arith.constant 0 : i32
    return %2, %c0_i32_0 : i32, i32
  }
  func.func @transform_1(%arg0: i32, %arg1: i32) -> (i32, i32) {
    %c1_i32 = arith.constant 1 : i32
    %0 = arith.muli %arg0, %c1_i32 : i32
    %1 = arith.addi %0, %arg1 : i32
    %c0_i32 = arith.constant 0 : i32
    %2 = arith.minsi %1, %c0_i32 : i32
    %c0_i32_0 = arith.constant 0 : i32
    %c0_i32_1 = arith.constant 0 : i32
    return %2, %c0_i32_0 : i32, i32
  }
  func.func @transform_2(%arg0: i32, %arg1: i32) -> (i32, i32) {
    %c0_i32 = arith.constant 0 : i32
    %c0_i32_0 = arith.constant 0 : i32
    return %c0_i32, %arg0 : i32, i32
  }
  func.func @transform_3(%arg0: i32, %arg1: i32) -> (i32, i32) {
    %c0_i32 = arith.constant 0 : i32
    %c0_i32_0 = arith.constant 0 : i32
    return %c0_i32, %arg0 : i32, i32
  }
}

</mosaic_0001>

<bundles_post_ra>
// kernel: tpu_custom_call.1
= control target key start
LH: loop header
LB: loop body
LE: loop exit
PB: predicated region body
PF: predicated region fallthrough
CT: control target
= control target key end

     0   :  { %9 = vsyncpa [#allocation5], 0  ;;  %s1559_s0 = inlined_call_operand.hbm [shape: f32[256,128], index: 0, kind: input, shape index: {}]   ;;  %s1560_s1 = inlined_call_operand.hbm [shape: f32[256,128], index: 1, kind: input, shape index: {}]   ;;  %s1561_s2 = inlined_call_operand.hbm [shape: f32[32,128], index: 2, kind: output, shape index: {0}]   ;;  %s1562_s3 = inlined_call_operand.hbm [shape: f32[32,128], index: 3, kind: output, shape index: {1}]  }
   0x1   :  { %10 = vsyncpa [#allocation8], 0 }
   0x2   :  { %11 = vsyncpa [#allocation6], 0 }
   0x3   :  { %12 = vsyncpa [#allocation11], 0  ;;  %s1471_s12 = smov [#allocation4]   ;;  %s1375_s16 = scalar_lea.hbm %s1559_s0, 4096 }
   0x4   :  { %s24_s13 = sshll.u32 %s1471_s12, 4  ;;  %p1376_p0 = scmp.ne.s32.totalorder %s1559_s0, %s1375_s16  ;;  %s25_s13 = int_to_ptr.vmem [resolvable:$true] %s24_s13 }
   0x5   :  { %p1379_p1 = scmp.lt.u32.totalorder %s1375_s16, %s1559_s0 }
   0x7   :  { %p1381_p2 = pnand %p1379_p1, %p1376_p0 }
   0x9   :  { %1384 = shalt.err (!%p1381_p2)
}
   0xa   :  { %s1385_s21 = scalar_lea.vmem %s25_s13, 4096  ;;  %p1390_p4 = scmp.lt.s32.totalorder %s25_s13, %s25_s13 }
   0xb   :  { %p1386_p3 = scmp.ne.s32.totalorder %s25_s13, %s1385_s21  ;;  %p1391_p5 = scmp.lt.s32.totalorder %s1385_s21, %s1385_s21 }
   0xd   :  { %p1392_p6 = por %p1391_p5, %p1390_p4 }
   0xf   :  { %p1393_p7 = pnand %p1392_p6, %p1386_p3 }
  0x11   :  { %1396 = shalt.err (!%p1393_p7)
}
  0x12   :  { %s1472_s22 = smov 128   ;;  %s1473_s23 = smov 8  }
  0x13   :  { %30 = dma.hbm_to_vmem [thread:$0]  %s1559_s0, 4096, %s25_s13, [#allocation5], %s1472_s22, %s1472_s22, %s1473_s23  }
  0x14   :  { %s1474_s26 = smov [#allocation7]   ;;  %s1397_s30 = scalar_lea.hbm %s1560_s1, 4096 }
  0x15   :  { %s42_s27 = sshll.u32 %s1474_s26, 4  ;;  %p1398_p8 = scmp.ne.s32.totalorder %s1560_s1, %s1397_s30  ;;  %s43_s27 = int_to_ptr.vmem [resolvable:$true] %s42_s27 }
  0x16   :  { %p1401_p9 = scmp.lt.u32.totalorder %s1397_s30, %s1560_s1 }
  0x18   :  { %p1403_p10 = pnand %p1401_p9, %p1398_p8 }
  0x1a   :  { %1406 = shalt.err (!%p1403_p10)
}
  0x1b   :  { %s1407_s8 = scalar_lea.vmem %s43_s27, 4096  ;;  %p1412_p12 = scmp.lt.s32.totalorder %s43_s27, %s43_s27 }
  0x1c   :  { %p1408_p11 = scmp.ne.s32.totalorder %s43_s27, %s1407_s8  ;;  %p1413_p13 = scmp.lt.s32.totalorder %s1407_s8, %s1407_s8 }
  0x1e   :  { %p1414_p0 = por %p1413_p13, %p1412_p12 }
  0x20   :  { %p1415_p1 = pnand %p1414_p0, %p1408_p11 }
  0x22   :  { %1418 = shalt.err (!%p1415_p1)
}
  0x23   :  { %48 = dma.hbm_to_vmem [thread:$0]  %s1560_s1, 4096, %s43_s27, [#allocation8], %s1472_s22, %s1472_s22, %s1473_s23  }
  0x24   :  { %1463 = dma.done.wait [#allocation5], 4096  }
  0x25   :  { %1464 = vsyncadd [#allocation5], 4294963200 }
  0x26   :  { %1465 = dma.done.wait [#allocation8], 4096  }
  0x27   :  { %1466 = vsyncadd [#allocation8], 4294963200  ;;  %v1475_v0 = vmov 0.0   ;;  %s1476_s10 = smov [#allocation10]   ;;  %v581_v1 = vld [vmem:[#allocation7] sm:$0xff]  ;;  %v582_v2 = vld [vmem:[#allocation7 + $0x8] sm:$0xff] }
  0x28   :  { %1281 = vst [vmem:[#allocation9 + $0x10] sm:$0xff] %v1475_v0  ;;  %1282 = vst [vmem:[#allocation9 + $0x18] sm:$0xff] %v1475_v0  ;;  %s1308_s11 = sshll.u32 %s1476_s10, 4  ;;  %v645_v3 = vadd.f32 1e-06, %v581_v1  ;;  %vm1104_vm0 = vcmp.le.f32.partialorder %v581_v1, 0.0  ;;  %s1309_s11 = int_to_ptr.vmem [resolvable:$true] %s1308_s11 }
  0x29   :  { %1289 = vst [vmem:[#allocation10 + $0x10] sm:$0xff] %v1475_v0  ;;  %1290 = vst [vmem:[#allocation10 + $0x18] sm:$0xff] %v1475_v0  ;;  %v646_v4 = vadd.f32 1e-06, %v582_v2  ;;  %v1361_v5 = vsel %vm1104_vm0, 1.0, %v1475_v0  ;;  %vm1105_vm1 = vcmp.le.f32.partialorder %v582_v2, 0.0  ;;  %p1424_p3 = scmp.lt.s32.totalorder %s1309_s11, %s1309_s11 }
  0x2a   :  { %1371 = vrcp.f32 %v645_v3  ;;  %1287 = vst [vmem:[#allocation10] sm:$0xff] %v1361_v5  ;;  %v1362_v6 = vsel %vm1105_vm1, 1.0, %v1475_v0  ;;  %s1419_s1 = scalar_lea.vmem %s1309_s11, 512 }
  0x2b   :  { %1373 = vrcp.f32 %v646_v4  ;;  %1288 = vst [vmem:[#allocation10 + $0x8] sm:$0xff] %v1362_v6  ;;  %p1420_p2 = scmp.ne.s32.totalorder %s1309_s11, %s1419_s1  ;;  %p1425_p4 = scmp.lt.s32.totalorder %s1419_s1, %s1419_s1 }
  0x2d   :  { %p1426_p5 = por %p1425_p4, %p1424_p3 }
  0x2f   :  { %p1427_p6 = pnand %p1426_p5, %p1420_p2 }
  0x31   :  { %1430 = shalt.err (!%p1427_p6)
}
  0x32   :  { %s1431_s14 = scalar_lea.hbm %s1562_s3, 512 }
  0x33   :  { %p1432_p7 = scmp.ne.s32.totalorder %s1562_s3, %s1431_s14  ;;  %p1435_p8 = scmp.lt.u32.totalorder %s1431_s14, %s1562_s3 }
  0x35   :  { %p1437_p9 = pnand %p1435_p8, %p1432_p7 }
  0x37   :  { %1440 = shalt.err (!%p1437_p9)
}
  0x38   :  { %1314 = dma.vmem_to_hbm [thread:$0]  %s1309_s11, 512, %s1562_s3, [#allocation11], %s1472_s22, %s1472_s22, %s1473_s23   ;;  %v613_v7 = vld [vmem:[#allocation4] sm:$0xff]  ;;  %v614_v8 = vld [vmem:[#allocation4 + $0x8] sm:$0xff]  ;;  %v1372_v11 = vpop.eup %1371  ;;  %vm1478_vm3 = vmmov 1  }
  0x39   :  { %v677_v9 = vsub.f32 %v581_v1, %v613_v7  ;;  %v678_v10 = vsub.f32 %v582_v2, %v614_v8  ;;  %v1374_v12 = vpop.eup %1373  ;;  %s1477_s21 = smov [#allocation9]  }
  0x3a   :  { %s1296_s24 = sshll.u32 %s1477_s21, 4  ;;  %s1297_s24 = int_to_ptr.vmem [resolvable:$true] %s1296_s24 }
  0x3b   :  { %v741_v13 = vmul.f32 %v1372_v11, %v677_v9  ;;  %v742_v14 = vmul.f32 %v1374_v12, %v678_v10  ;;  %s1441_s3 = scalar_lea.vmem %s1297_s24, 512  ;;  %p1446_p11 = scmp.lt.s32.totalorder %s1297_s24, %s1297_s24 }
  0x3c   :  { %p1442_p10 = scmp.ne.s32.totalorder %s1297_s24, %s1441_s3  ;;  %p1447_p12 = scmp.lt.s32.totalorder %s1441_s3, %s1441_s3 }
  0x3d   :  { %v773_v15 = vand.u32 2147483647, %v741_v13  ;;  %v774_v16 = vand.u32 2147483647, %v742_v14 }
  0x3e   :  { %p1448_p13 = por %p1447_p12, %p1446_p11 }
  0x3f   :  { %vm936_vm2 = vcmp.eq.f32.partialorder %v773_v15, inf  ;;  %vm937_vm5 = vcmp.eq.f32.partialorder %v774_v16, inf }
  0x40   :  { %vm968_vm4 = vmxor %vm936_vm2, %vm1478_vm3  ;;  %p1449_p0 = pnand %p1448_p13, %p1442_p10 }
  0x41   :  { %v1032_v17 = vsel %vm968_vm4, %v773_v15, 0.0  ;;  %vm969_vm6 = vmxor %vm937_vm5, %vm1478_vm3 }
  0x42   :  { %1279 = vst [vmem:[#allocation9] sm:$0xff] %v1032_v17  ;;  %v1033_v18 = vsel %vm969_vm6, %v774_v16, 0.0 }
  0x43   :  { %1280 = vst [vmem:[#allocation9 + $0x8] sm:$0xff] %v1033_v18 }
  0x44   :  { %1452 = shalt.err (!%p1449_p0)
}
  0x45   :  { %s1453_s27 = scalar_lea.hbm %s1561_s2, 512 }
  0x46   :  { %p1454_p1 = scmp.ne.s32.totalorder %s1561_s2, %s1453_s27  ;;  %p1457_p2 = scmp.lt.u32.totalorder %s1453_s27, %s1561_s2 }
  0x48   :  { %p1459_p3 = pnand %p1457_p2, %p1454_p1 }
  0x4a   :  { %1462 = shalt.err (!%p1459_p3)
}
  0x4b   :  { %1302 = dma.vmem_to_hbm [thread:$0]  %s1297_s24, 512, %s1561_s2, [#allocation6], %s1472_s22, %s1472_s22, %s1473_s23  }
  0x4c   :  { %1467 = dma.done.wait [#allocation6], 512  }
  0x4d   :  { %1468 = vsyncadd [#allocation6], 4294966784 }
  0x4e   :  { %1469 = dma.done.wait [#allocation11], 512  }
  0x4f   :  { %1470 = vsyncadd [#allocation11], 4294966784 }
  0x50   :  { %1321 = vsyncpa [#allocation5], 1 }
  0x51   :  { %1322 = vsyncpa [#allocation8], 1 }
  0x52   :  { %1323 = vsyncpa [#allocation6], 1 }
  0x53   :  { %1324 = vsyncpa [#allocation11], 1 }

</bundles_post_ra>
